<compile_context>
chip_gen: v7x
topology: tpu7x:2x2x1
jax: 0.10.0
libtpu: 0.0.40
codegen_flags: <defaults>
</compile_context>

<pallas_src>
import functools

import jax
import jax.numpy as jnp
from jax.experimental import pallas as pl
from jax.experimental.pallas import tpu as pltpu

MENTION_SIZE = 4
LANES = 128                 # vreg lane width; lane-dense output -> full-width vst
MAX_TILE_ROWS = 4096        # 4096x128: 6 MiB HBM traffic/step, ~12 MiB double-buffered VMEM
MIN_PALLAS_ELEMS = 1 << 21  # below ~2M labels, fused XLA elementwise beats pallas_call fixed cost


def make_sim_lookup(alpha: float = 0.5) -> jnp.ndarray:
    """Flattened 4x4 table, mirroring MentionSim.__init__ (used as reference)."""
    a = float(alpha)
    return jnp.asarray(
        [1.0, 1.0 - a, 1.0, 0.0,
         1.0 - a, (1.0 - a) ** 2 + a ** 2, 1.0 - a, a,
         1.0, 1.0 - a, 1.0, 0.0,
         0.0, a, 0.0, 1.0],
        dtype=jnp.float32,
    )


def _cdiv(a: int, b: int) -> int:
    return -(-a // b)


def _round_up(x: int, m: int) -> int:
    return _cdiv(x, m) * m


def _sim_formula(x, y, alpha):
    """Exact algebraic form of the 4x4 similarity table (pure VPU ops, no gather)."""
    a = jnp.float32(alpha)
    zero = jnp.float32(0.0)
    one = jnp.float32(1.0)
    p_x = jnp.where(x == 1, a, zero) + jnp.where(x == 3, one, zero)
    p_y = jnp.where(y == 1, a, zero) + jnp.where(y == 3, one, zero)
    # e.g. sim(1,1) = (1-a)^2 + a^2, sim(1,3) = a, sim(0,3) = 0, sim(0,2) = 1.
    return (one - p_x) * (one - p_y) + p_x * p_y


def _mention_sim_kernel(in_ref, tgt_ref, out_ref, *, alpha: float):
    # Compare directly on the stored integer dtype — no widening / unpacking.
    out_ref[...] = _sim_formula(in_ref[...], tgt_ref[...], alpha)


def mention_sim(input_, target, alpha: float = 0.5, *,
                max_tile_rows: int = MAX_TILE_ROWS,
                min_pallas_elems: int = MIN_PALLAS_ELEMS):
    assert input_.shape == target.shape
    B, L = input_.shape
    total = B * L

    # Small-input bypass: let XLA fuse the elementwise formula; Pallas only
    # pays off for multi-MB label tensors.
    if total < min_pallas_elems:
        return _sim_formula(input_, target, alpha).astype(jnp.float32)

    # Lane-dense view: flatten (free) and reshape to (rows, 128).  Only pad if
    # total is not a multiple of 128 (rare; <=127 extra elements).
    x = input_.reshape(-1)
    y = target.reshape(-1)
    if total % LANES != 0:
        # TODO(synk): this single pad copy could be removed with
        # CompilerParams(allow_input_fusion=...) or a ragged-tail JAX path.
        pad = _round_up(total, LANES) - total
        x = jnp.pad(x, (0, pad))
        y = jnp.pad(y, (0, pad))
    rows = x.shape[0] // LANES
    x = x.reshape(rows, LANES)
    y = y.reshape(rows, LANES)

    # Adaptive tile: big enough to amortize the ~0.35 us per-step overhead,
    # capped so the double-buffered working set fits v5e's 16 MiB scoped VMEM,
    # and >=2 grid steps when possible so v7x's two TensorCores both get work.
    n_steps = max(1, _cdiv(rows, max_tile_rows))
    if rows >= 16:
        n_steps = max(n_steps, 2)
    tile_r = _cdiv(rows, n_steps)
    if rows >= 8:
        tile_r = _round_up(tile_r, 8)
    tile_r = min(tile_r, rows)          # tile is a multiple of 8 or the full dim
    grid = (_cdiv(rows, tile_r),)       # partial last block is masked by Pallas

    out = pl.pallas_call(
        functools.partial(_mention_sim_kernel, alpha=float(alpha)),
        out_shape=jax.ShapeDtypeStruct((rows, LANES), jnp.float32),
        grid=grid,
        in_specs=[
            pl.BlockSpec((tile_r, LANES), lambda i: (i, 0)),  # input_ labels (int32)
            pl.BlockSpec((tile_r, LANES), lambda i: (i, 0)),  # target labels (int32)
        ],
        out_specs=pl.BlockSpec((tile_r, LANES), lambda i: (i, 0)),
        compiler_params=pltpu.CompilerParams(
            dimension_semantics=("parallel",),  # 2-TC sharding on v7x; no-op on v5e/v6e
        ),
    )(x, y)

    # Drop the (rare) padded tail and restore (B, L).  When total % 128 == 0
    # the slice is a no-op and the reshape is free.
    return out.reshape(-1)[:total].reshape(B, L)


if __name__ == "__main__":
    key = jax.random.PRNGKey(0)
    k1, k2, k3, k4 = jax.random.split(key, 4)
    table = make_sim_lookup(0.5)

    # CheXpert-sized input (batch=2, 14 labels): takes the fused pure-JAX bypass.
    batch_size, num_labels = 2, 14
    input_ = jax.random.randint(k1, (batch_size, num_labels), 0, MENTION_SIZE, dtype=jnp.int32)
    target = jax.random.randint(k2, (batch_size, num_labels), 0, MENTION_SIZE, dtype=jnp.int32)
    sim = mention_sim(input_, target, alpha=0.5)
    jax.block_until_ready(sim)
    ref = table[input_ * MENTION_SIZE + target]
    assert sim.shape == (batch_size, num_labels)
    assert sim.dtype == jnp.float32
    assert jnp.allclose(sim, ref), (sim, ref)

    # Force the Pallas path (bypass disabled) on a multi-tile, lane-aligned input.
    big_in = jax.random.randint(k3, (4096, 14), 0, MENTION_SIZE, dtype=jnp.int32)
    big_tg = jax.random.randint(k4, (4096, 14), 0, MENTION_SIZE, dtype=jnp.int32)
    big_sim = mention_sim(big_in, big_tg, alpha=0.5, min_pallas_elems=0)
    jax.block_until_ready(big_sim)
    big_ref = table[big_in * MENTION_SIZE + big_tg]
    assert big_sim.shape == (4096, 14) and big_sim.dtype == jnp.float32
    assert jnp.allclose(big_sim, big_ref)

    # Also exercise a ragged total (not a multiple of 128) and a non-trivial alpha
    # through the Pallas path.
    rag_in = jax.random.randint(k1, (37, 14), 0, MENTION_SIZE, dtype=jnp.int32)
    rag_tg = jax.random.randint(k2, (37, 14), 0, MENTION_SIZE, dtype=jnp.int32)
    rag_sim = mention_sim(rag_in, rag_tg, alpha=0.25, min_pallas_elems=0)
    jax.block_until_ready(rag_sim)
    rag_ref = make_sim_lookup(0.25)[rag_in * MENTION_SIZE + rag_tg]
    assert jnp.allclose(rag_sim, rag_ref)

    print("KERNEL_OK")
</pallas_src>

<mosaic_0001>
module attributes {stable_mosaic.version = 11 : i64} {
  func.func @_mention_sim_kernel(%arg0: i32, %arg1: memref<224x128xi32, #tpu.memory_space<vmem>>, %arg2: memref<224x128xi32, #tpu.memory_space<vmem>>, %arg3: memref<224x128xf32, #tpu.memory_space<vmem>>) attributes {dimension_semantics = [#tpu.dimension_semantics<parallel>], iteration_bounds = array<i64: 2>, scalar_prefetch = 0 : i64, scratch_operands = 0 : i64, tpu.core_type = #tpu.core_type<tc>, window_params = [{transform_indices = @transform_0, window_bounds = array<i64: 224, 128>}, {transform_indices = @transform_1, window_bounds = array<i64: 224, 128>}, {transform_indices = @transform_2, window_bounds = array<i64: 224, 128>}]} {
    %c0 = arith.constant 0 : index
    %c0_0 = arith.constant 0 : index
    %0 = vector.load %arg1[%c0, %c0_0] : memref<224x128xi32, #tpu.memory_space<vmem>>, vector<224x128xi32>
    %c0_1 = arith.constant 0 : index
    %c0_2 = arith.constant 0 : index
    %1 = vector.load %arg2[%c0_1, %c0_2] : memref<224x128xi32, #tpu.memory_space<vmem>>, vector<224x128xi32>
    %c1_i32 = arith.constant 1 : i32
    %2 = vector.broadcast %c1_i32 : i32 to vector<224x128xi32>
    %3 = arith.cmpi eq, %0, %2 : vector<224x128xi32>
    %cst = arith.constant 5.000000e-01 : f32
    %cst_3 = arith.constant 0.000000e+00 : f32
    %4 = vector.broadcast %cst : f32 to vector<224x128xf32>
    %5 = vector.broadcast %cst_3 : f32 to vector<224x128xf32>
    %6 = arith.select %3, %4, %5 : vector<224x128xi1>, vector<224x128xf32>
    %c3_i32 = arith.constant 3 : i32
    %7 = vector.broadcast %c3_i32 : i32 to vector<224x128xi32>
    %8 = arith.cmpi eq, %0, %7 : vector<224x128xi32>
    %cst_4 = arith.constant 1.000000e+00 : f32
    %cst_5 = arith.constant 0.000000e+00 : f32
    %9 = vector.broadcast %cst_4 : f32 to vector<224x128xf32>
    %10 = vector.broadcast %cst_5 : f32 to vector<224x128xf32>
    %11 = arith.select %8, %9, %10 : vector<224x128xi1>, vector<224x128xf32>
    %12 = arith.addf %6, %11 : vector<224x128xf32>
    %c1_i32_6 = arith.constant 1 : i32
    %13 = vector.broadcast %c1_i32_6 : i32 to vector<224x128xi32>
    %14 = arith.cmpi eq, %1, %13 : vector<224x128xi32>
    %cst_7 = arith.constant 5.000000e-01 : f32
    %cst_8 = arith.constant 0.000000e+00 : f32
    %15 = vector.broadcast %cst_7 : f32 to vector<224x128xf32>
    %16 = vector.broadcast %cst_8 : f32 to vector<224x128xf32>
    %17 = arith.select %14, %15, %16 : vector<224x128xi1>, vector<224x128xf32>
    %c3_i32_9 = arith.constant 3 : i32
    %18 = vector.broadcast %c3_i32_9 : i32 to vector<224x128xi32>
    %19 = arith.cmpi eq, %1, %18 : vector<224x128xi32>
    %cst_10 = arith.constant 1.000000e+00 : f32
    %cst_11 = arith.constant 0.000000e+00 : f32
    %20 = vector.broadcast %cst_10 : f32 to vector<224x128xf32>
    %21 = vector.broadcast %cst_11 : f32 to vector<224x128xf32>
    %22 = arith.select %19, %20, %21 : vector<224x128xi1>, vector<224x128xf32>
    %23 = arith.addf %17, %22 : vector<224x128xf32>
    %cst_12 = arith.constant 1.000000e+00 : f32
    %24 = vector.broadcast %cst_12 : f32 to vector<224x128xf32>
    %25 = arith.subf %24, %12 : vector<224x128xf32>
    %cst_13 = arith.constant 1.000000e+00 : f32
    %26 = vector.broadcast %cst_13 : f32 to vector<224x128xf32>
    %27 = arith.subf %26, %23 : vector<224x128xf32>
    %28 = arith.mulf %25, %27 : vector<224x128xf32>
    %29 = arith.mulf %12, %23 : vector<224x128xf32>
    %30 = arith.addf %28, %29 : vector<224x128xf32>
    %c0_14 = arith.constant 0 : index
    %c0_15 = arith.constant 0 : index
    %31 = vector.load %arg3[%c0_14, %c0_15] : memref<224x128xf32, #tpu.memory_space<vmem>>, vector<224x128xf32>
    tpu.vector_store %arg3[%c0_14, %c0_15], %30 {strides = array<i32>} : memref<224x128xf32, #tpu.memory_space<vmem>>, vector<224x128xf32>,
    return
  }
  func.func @transform_0(%arg0: i32) -> (i32, i32) {
    %c0_i32 = arith.constant 0 : i32
    %c0_i32_0 = arith.constant 0 : i32
    return %arg0, %c0_i32 : i32, i32
  }
  func.func @transform_1(%arg0: i32) -> (i32, i32) {
    %c0_i32 = arith.constant 0 : i32
    %c0_i32_0 = arith.constant 0 : i32
    return %arg0, %c0_i32 : i32, i32
  }
  func.func @transform_2(%arg0: i32) -> (i32, i32) {
    %c0_i32 = arith.constant 0 : i32
    %c0_i32_0 = arith.constant 0 : i32
    return %arg0, %c0_i32 : i32, i32
  }
}

</mosaic_0001>

<bundles_post_ra>
// kernel: tpu_custom_call.1
= control target key start
LH: loop header
LB: loop body
LE: loop exit
PB: predicated region body
PF: predicated region fallthrough
CT: control target
= control target key end

     0   :  { %7 = vsyncpa [#allocation3], 0  ;;  %s1470_s0 = inlined_call_operand.hbm [shape: s32[448,128], index: 0, kind: input, shape index: {}]   ;;  %s1471_s1 = inlined_call_operand.hbm [shape: s32[448,128], index: 1, kind: input, shape index: {}]   ;;  %s1472_s2 = inlined_call_operand.hbm [shape: f32[448,128], index: 2, kind: output, shape index: {}]  }
   0x1   :  { %9 = vsyncpa [#allocation3 + $0x1], 0 }
   0x2   :  { %10 = vsyncpa [#allocation6], 0 }
   0x3   :  { %12 = vsyncpa [#allocation6 + $0x1], 0 }
   0x4   :  { %13 = vsyncpa [#allocation4], 0 }
   0x5   :  { %15 = vsyncpa [#allocation4 + $0x1], 0  ;;  %s1045_s9 = smov 0   ;;  %s1047_s10 = smov 0  }
   0x6   :  { %s1049_s11 = smov 0   ;;  %s1051_s12 = smov 0  }
   0x7 LB: > { %s1066_s13 = sadd.s32 4294967295, %s1020_s12   ;;  %s819_s14 = sadd.s32 4294967294, %s1020_s12   ;;  %s1020_s12 = sphi %s1051_s12, %s1487_s12   ;;  %s1016_s11 = sphi %s1049_s11, %s1486_s11   ;;  %s1012_s10 = sphi %s1047_s10, %s1485_s10   ;;  %s1008_s9 = sphi %s1045_s9, %s1484_s9  }
   0x8   : > { %s1070_s15 = sadd.s32 1, %s1020_s12   ;;  %s28_s16 = sadd.s32 1, %s1016_s11 }
   0x9   : > { %s25_s17 = ssub.s32 %s1020_s12, %s1070_s15  ;;  %p35_p0 = scmp.ne.s32.totalorder %s1016_s11, %s1012_s10 }
   0xa   : > { %p26_p1 = scmp.eq.s32.totalorder %s25_s17, 0  ;;  %p36_p2 = scmp.eq.s32.totalorder %s1020_s12, 0 }
   0xb   : > { %p41_p3 = scmp.ne.s32.totalorder %s1012_s10, %s1008_s9  ;;  %p42_p4 = scmp.eq.s32.totalorder %s1066_s13, 0 }
   0xc   : > { %s1082_s18 = scalar_select %p26_p1, %s1016_s11, %s28_s16  }
   0xd   : > { %p37_p5 = por %p36_p2, %p35_p0  ;;  %p1084_p6 = por %p42_p4, %p41_p3 }
   0xe   : > { %p91_p7 = scmp.eq.s32.totalorder %s1066_s13, 1  ;;  %p97_p8 = scmp.eq.s32.totalorder %s819_s14, 1 }
   0xf   : > { %s1475_s19 = scalar_select %p1084_p6, 1, 0 }
  0x10   : > { %p851_p10 = scmp.lt.s32.totalorder %s1020_s12, 2  ;;  %p1091_p11 = por %p91_p7, %p35_p0 }
  0x11   : > { %p1095_p12 = por %p97_p8, %p41_p3  ;;  %s1100_s22 = sand.u32 1, %s1016_s11  }
  0x12   : > { %s1476_s20 = scalar_select %p1091_p11, 1, 0 }
  0x13   : > { %s1477_s21 = scalar_select %p1095_p12, 1, 0 }
  0x14   : > { %s828_s23 = smul.u32 3584, %s1020_s12  ;;  %p1111_p13 = pnand %p851_p10, %p37_p5 }
  0x15   : > { %s831_s24 = smul.u32 224, %s1100_s22  ;;  %s118_s3 = scalar_lea.sflag [#allocation3], %s1100_s22 }
  0x16   : > { %s1109_s27 = scalar_lea.hbm %s1470_s0, %s828_s23  ;;  %p892_p1 = pneg %p1111_p13 }
  0x17   : > { %s121_s29 = scalar_lea.vmem [#allocation2], %s831_s24  ;;  %s890_s4 = scalar_lea.hbm %s1109_s27, 3584 }
  0x18   : > { %s128_s30 = sshll.u32 %s121_s29, 4  ;;  %p891_p0 = scmp.ne.s32.totalorder %s1109_s27, %s890_s4  ;;  %s1117_s30 = int_to_ptr.vmem [resolvable:$true] %s128_s30 }
  0x19   : > { %s895_s7 = scalar_lea.hbm %s1470_s0, 7168  ;;  %p896_p4 = scmp.lt.u32.totalorder %s1109_s27, %s1470_s0 }
  0x1a   : > { %p893_p2 = pnand %p892_p1, %p891_p0  ;;  %p897_p5 = scmp.lt.u32.totalorder %s895_s7, %s890_s4 }
  0x1b   : > { %p899_p8 = scmp.lt.u32.totalorder %s890_s4, %s1109_s27 }
  0x1c   : > { %p894_p3 = pneg %p893_p2  ;;  %p898_p7 = por %p897_p5, %p896_p4 }
  0x1e   : > { %p900_p10 = por %p899_p8, %p898_p7 }
  0x20   : > { %p901_p9 = pnand %p900_p10, %p894_p3 }
  0x22   : > { %904 = shalt.err (!%p901_p9)
}
  0x23   : > { %s905_s16 = scalar_lea.vmem %s1117_s30, 3584  ;;  %s1022_s17 = smov [#allocation2]  }
  0x24   : > { %p906_p0 = scmp.ne.s32.totalorder %s1117_s30, %s905_s16  ;;  %s910_s25 = sshll.u32 %s1022_s17, 4  ;;  %s911_s25 = int_to_ptr.vmem [resolvable:$false] %s910_s25 }
  0x25   : > { %s912_s26 = scalar_lea.vmem %s911_s25, 7168  ;;  %p913_p11 = scmp.lt.s32.totalorder %s1117_s30, %s911_s25 }
  0x26   : > { %p908_p2 = pnand %p906_p0, %p892_p1  ;;  %p914_p4 = scmp.lt.s32.totalorder %s912_s26, %s905_s16 }
  0x28   : > { %p909_p12 = pneg %p908_p2  ;;  %p915_p5 = por %p914_p4, %p913_p11 }
  0x2a   : > { %p916_p7 = pnand %p915_p5, %p909_p12 }
  0x2c   : > { %919 = shalt.err (!%p916_p7)
}
  0x2d   : > { %s1023_s29 = smov 128   ;;  %s1024_s4 = smov 8  }
  0x2e   : > { %843 = dma.hbm_to_vmem [thread:$0]  (!%p1111_p13), %s1109_s27, 3584, %s1117_s30, %s118_s3, %s1023_s29, %s1023_s29, %s1024_s4  }
  0x2f   : > { %p824_p9 = scmp.ge.s32.totalorder %s1020_s12, 1  ;;  %p157_p11 = scmp.lt.s32.totalorder %s1020_s12, 3 }
  0x30   : > { %s1161_s8 = scalar_lea.hbm %s1471_s1, %s828_s23  ;;  %s142_s14 = scalar_lea.vmem [#allocation5], %s831_s24 }
  0x31   : > { %p1152_p12 = pnand %p824_p9, %p157_p11  ;;  %s149_s16 = sshll.u32 %s142_s14, 4  ;;  %s1165_s16 = int_to_ptr.vmem [resolvable:$true] %s149_s16 }
  0x32   : > { %s139_s27 = scalar_lea.sflag [#allocation6], %s1100_s22  ;;  %s920_s30 = scalar_lea.hbm %s1161_s8, 3584 }
  0x33   : > { %p921_p3 = scmp.ne.s32.totalorder %s1161_s8, %s920_s30  ;;  %s925_s23 = scalar_lea.hbm %s1471_s1, 7168 }
  0x34   : > { %p926_p0 = scmp.lt.u32.totalorder %s1161_s8, %s1471_s1  ;;  %p927_p2 = scmp.lt.u32.totalorder %s925_s23, %s920_s30 }
  0x35   : > { %p923_p8 = pnand %p921_p3, %p892_p1  ;;  %p929_p5 = scmp.lt.u32.totalorder %s920_s30, %s1161_s8 }
  0x36   : > { %p928_p4 = por %p927_p2, %p926_p0 }
  0x37   : > { %p924_p10 = pneg %p923_p8 }
  0x38   : > { %p930_p7 = por %p929_p5, %p928_p4 }
  0x3a   : > { %p931_p9 = pnand %p930_p7, %p924_p10 }
  0x3c   : > { %934 = shalt.err (!%p931_p9)
}
  0x3d   : > { %s935_s24 = scalar_lea.vmem %s1165_s16, 3584  ;;  %s1025_s6 = smov [#allocation5]  }
  0x3e   : > { %p936_p11 = scmp.ne.s32.totalorder %s1165_s16, %s935_s24  ;;  %s940_s7 = sshll.u32 %s1025_s6, 4  ;;  %s941_s7 = int_to_ptr.vmem [resolvable:$false] %s940_s7 }
  0x3f   : > { %s942_s14 = scalar_lea.vmem %s941_s7, 7168  ;;  %p943_p6 = scmp.lt.s32.totalorder %s1165_s16, %s941_s7 }
  0x40   : > { %p938_p3 = pnand %p936_p11, %p892_p1  ;;  %p944_p0 = scmp.lt.s32.totalorder %s942_s14, %s935_s24 }
  0x42   : > { %p939_p8 = pneg %p938_p3  ;;  %p945_p2 = por %p944_p0, %p943_p6 }
  0x44   : > { %p946_p4 = pnand %p945_p2, %p939_p8 }
  0x46   : > { %949 = shalt.err (!%p946_p4)
}
  0x47   : > { %846 = dma.hbm_to_vmem [thread:$0]  (!%p1111_p13), %s1161_s8, 3584, %s1165_s16, %s139_s27, %s1023_s29, %s1023_s29, %s1024_s4  }
  0x48   : > { %161 = sbr.rel (%p1152_p12) target bundleno = 210 (0xd2), region = 28  ;;  %s1199_s30 = sand.u32 (!%p1152_p12), 1, %s1012_s10  }
  0x49   : > { %s1202_s3 = smul.u32 (!%p1152_p12), 224, %s1199_s30  ;;  %s164_s28 = scalar_lea.sflag (!%p1152_p12), [#allocation3], %s1199_s30 }
  0x4a   : > { %p1480_p6 = scmp.ne.s32.totalorder (!%p1152_p12), %s1475_s19, 0 }
  0x4b   : > { %s1206_s17 = scalar_lea.vmem (!%p1152_p12), [#allocation2], %s1202_s3 }
  0x4f   : > { %995 = dma.done.wait (%p1480_p6), %s164_s28, 3584  }
  0x50   : > { %997 = vsyncadd (%p1480_p6), %s164_s28, 4294963712  ;;  %s173_s22 = scalar_lea.sflag [#allocation6], %s1199_s30  ;;  %s1214_s29 = scalar_lea.vmem [#allocation5], %s1202_s3 }
  0x51   : > { %999 = dma.done.wait (%p1480_p6), %s173_s22, 3584  }
  0x52   : > { %1001 = vsyncadd (%p1480_p6), %s173_s22, 4294963712  ;;  %v205_v0 = vld [vmem:[%s1206_s17] sm:$0xff]  ;;  %v206_v2 = vld [vmem:[%s1206_s17 + $0x8] sm:$0xff]  ;;  %v1026_v4 = vmov 0.0   ;;  %s1243_s19 = scalar_lea.vmem [#allocation7], %s1202_s3  ;;  %s830_s4 = smul.u32 3584, %s1066_s13 }
  0x53   : > { %v233_v1 = vld [vmem:[%s1214_s29] sm:$0xff]  ;;  %vm261_vm0 = vcmp.eq.s32.totalorder %v205_v0, 1  ;;  %vm317_vm1 = vcmp.eq.s32.totalorder %v205_v0, 3  ;;  %v234_v3 = vld [vmem:[%s1214_s29 + $0x8] sm:$0xff]  ;;  %vm262_vm4 = vcmp.eq.s32.totalorder %v206_v2, 1  ;;  %vm318_vm5 = vcmp.eq.s32.totalorder %v206_v2, 3 }
  0x54   : > { %vm401_vm2 = vcmp.eq.s32.totalorder %v233_v1, 1  ;;  %vm457_vm3 = vcmp.eq.s32.totalorder %v233_v1, 3  ;;  %v289_v5 = vsel %vm261_vm0, 0.5, %v1026_v4  ;;  %v345_v6 = vsel %vm317_vm1, 1.0, %v1026_v4  ;;  %v207_v11 = vld [vmem:[%s1206_s17 + $0x10] sm:$0xff]  ;;  %v208_v19 = vld [vmem:[%s1206_s17 + $0x18] sm:$0xff]  ;;  %s1425_s27 = scalar_lea.hbm %s1472_s2, %s830_s4 }
  0x55   : > { %v429_v7 = vsel %vm401_vm2, 0.5, %v1026_v4  ;;  %v485_v8 = vsel %vm457_vm3, 1.0, %v1026_v4  ;;  %v373_v9 = vadd.f32 %v345_v6, %v289_v5  ;;  %v290_v12 = vsel %vm262_vm4, 0.5, %v1026_v4  ;;  %v235_v18 = vld [vmem:[%s1214_s29 + $0x10] sm:$0xff]  ;;  %v236_v31 = vld [vmem:[%s1214_s29 + $0x18] sm:$0xff]  ;;  %v209_v32 = vld [vmem:[%s1206_s17 + $0x20] sm:$0xff] }
  0x56   : > { %v513_v10 = vadd.f32 %v485_v8, %v429_v7  ;;  %v346_v13 = vsel %vm318_vm5, 1.0, %v1026_v4  ;;  %vm402_vm6 = vcmp.eq.s32.totalorder %v234_v3, 1  ;;  %vm458_vm7 = vcmp.eq.s32.totalorder %v234_v3, 3  ;;  %v237_v41 = vld [vmem:[%s1214_s29 + $0x20] sm:$0xff]  ;;  %v210_v46 = vld [vmem:[%s1206_s17 + $0x28] sm:$0xff]  ;;  %v211_v63 = vld [vmem:[%s1206_s17 + $0x30] sm:$0xff] }
  0x57   : > { %v541_v14 = vsub.f32 1.0, %v373_v9  ;;  %v374_v17 = vadd.f32 %v346_v13, %v290_v12  ;;  %v430_v20 = vsel %vm402_vm6, 0.5, %v1026_v4  ;;  %v486_v21 = vsel %vm458_vm7, 1.0, %v1026_v4  ;;  %v238_v55 = vld [vmem:[%s1214_s29 + $0x28] sm:$0xff]  ;;  %v239_v7 = vld [vmem:[%s1214_s29 + $0x30] sm:$0xff]  ;;  %v212_v8 = vld [vmem:[%s1206_s17 + $0x38] sm:$0xff] }
  0x58   : > { %v569_v15 = vsub.f32 1.0, %v513_v10  ;;  %v625_v16 = vmul.f32 %v513_v10, %v373_v9  ;;  %vm263_vm8 = vcmp.eq.s32.totalorder %v207_v11, 1  ;;  %vm319_vm9 = vcmp.eq.s32.totalorder %v207_v11, 3  ;;  %s723_s5 = sshll.u32 %s1243_s19, 4  ;;  %s710_s23 = scalar_lea.sflag [#allocation4], %s1199_s30  ;;  %s1420_s5 = int_to_ptr.vmem [resolvable:$true] %s723_s5 }
  0x59   : > { %v514_v23 = vadd.f32 %v486_v21, %v430_v20  ;;  %v542_v24 = vsub.f32 1.0, %v374_v17  ;;  %v291_v25 = vsel %vm263_vm8, 0.5, %v1026_v4  ;;  %v347_v26 = vsel %vm319_vm9, 1.0, %v1026_v4  ;;  %v240_v20 = vld [vmem:[%s1214_s29 + $0x38] sm:$0xff]  ;;  %v213_v21 = vld [vmem:[%s1206_s17 + $0x40] sm:$0xff]  ;;  %s950_s25 = scalar_lea.vmem %s1420_s5, 3584 }
  0x5a   : > { %v597_v22 = vmul.f32 %v569_v15, %v541_v14  ;;  %vm403_vm10 = vcmp.eq.s32.totalorder %v235_v18, 1  ;;  %vm459_vm11 = vcmp.eq.s32.totalorder %v235_v18, 3  ;;  %vm264_vm12 = vcmp.eq.s32.totalorder %v208_v19, 1  ;;  %p951_p13 = scmp.ne.s32.totalorder %s1420_s5, %s950_s25  ;;  %p1481_p1 = scmp.ne.s32.totalorder %s1476_s20, 0 }
  0x5b   : > { %v570_v28 = vsub.f32 1.0, %v514_v23  ;;  %v626_v29 = vmul.f32 %v514_v23, %v374_v17  ;;  %v375_v30 = vadd.f32 %v347_v26, %v291_v25  ;;  %v431_v33 = vsel %vm403_vm10, 0.5, %v1026_v4  ;;  %s1027_s13 = smov [#allocation7]  }
  0x5c   : > { %v653_v27 = vadd.f32 %v625_v16, %v597_v22  ;;  %v487_v34 = vsel %vm459_vm11, 1.0, %v1026_v4  ;;  %v292_v35 = vsel %vm264_vm12, 0.5, %v1026_v4  ;;  %vm320_vm13 = vcmp.eq.s32.totalorder %v208_v19, 3  ;;  %p952_p12 = pnand %p951_p13, %p1481_p1  ;;  %s954_s26 = sshll.u32 %s1027_s13, 4  ;;  %s955_s26 = int_to_ptr.vmem [resolvable:$false] %s954_s26 }
  0x5d   : > { %v598_v36 = vmul.f32 %v570_v28, %v542_v24  ;;  %v515_v37 = vadd.f32 %v487_v34, %v431_v33  ;;  %v543_v38 = vsub.f32 1.0, %v375_v30  ;;  %v348_v39 = vsel %vm320_vm13, 1.0, %v1026_v4  ;;  %s956_s24 = scalar_lea.vmem %s955_s26, 7168  ;;  %p957_p5 = scmp.lt.s32.totalorder %s1420_s5, %s955_s26 }
  0x5e   : > { %681 = vst [vmem:[%s1243_s19] sm:$0xff] %v653_v27  ;;  %v376_v40 = vadd.f32 %v348_v39, %v292_v35  ;;  %vm404_vm14 = vcmp.eq.s32.totalorder %v236_v31, 1  ;;  %vm460_vm15 = vcmp.eq.s32.totalorder %v236_v31, 3  ;;  %vm265_vm0 = vcmp.eq.s32.totalorder %v209_v32, 1  ;;  %v214_v35 = vld [vmem:[%s1206_s17 + $0x48] sm:$0xff]  ;;  %p953_p10 = pneg %p952_p12  ;;  %p958_p7 = scmp.lt.s32.totalorder %s956_s24, %s950_s25 }
  0x5f   : > { %v654_v42 = vadd.f32 %v626_v29, %v598_v36  ;;  %v571_v43 = vsub.f32 1.0, %v515_v37  ;;  %v627_v44 = vmul.f32 %v515_v37, %v375_v30  ;;  %v432_v45 = vsel %vm404_vm14, 0.5, %v1026_v4  ;;  %v241_v30 = vld [vmem:[%s1214_s29 + $0x40] sm:$0xff] }
  0x60   : > { %v488_v47 = vsel %vm460_vm15, 1.0, %v1026_v4  ;;  %v544_v48 = vsub.f32 1.0, %v376_v40  ;;  %v293_v49 = vsel %vm265_vm0, 0.5, %v1026_v4  ;;  %vm321_vm1 = vcmp.eq.s32.totalorder %v209_v32, 3  ;;  %p959_p9 = por %p958_p7, %p957_p5 }
  0x61   : > { %682 = vst [vmem:[%s1243_s19 + $0x8] sm:$0xff] %v654_v42  ;;  %v599_v50 = vmul.f32 %v571_v43, %v543_v38  ;;  %v516_v51 = vadd.f32 %v488_v47, %v432_v45  ;;  %v349_v52 = vsel %vm321_vm1, 1.0, %v1026_v4  ;;  %vm405_vm2 = vcmp.eq.s32.totalorder %v237_v41, 1 }
  0x62   : > { %v377_v53 = vadd.f32 %v349_v52, %v293_v49  ;;  %v433_v54 = vsel %vm405_vm2, 0.5, %v1026_v4  ;;  %vm461_vm3 = vcmp.eq.s32.totalorder %v237_v41, 3  ;;  %vm266_vm4 = vcmp.eq.s32.totalorder %v210_v46, 1  ;;  %v215_v52 = vld [vmem:[%s1206_s17 + $0x50] sm:$0xff]  ;;  %p960_p11 = pnand %p959_p9, %p953_p10 }
  0x63   : > { %v655_v56 = vadd.f32 %v627_v44, %v599_v50  ;;  %v572_v57 = vsub.f32 1.0, %v516_v51  ;;  %v628_v58 = vmul.f32 %v516_v51, %v376_v40  ;;  %v489_v59 = vsel %vm461_vm3, 1.0, %v1026_v4  ;;  %v242_v44 = vld [vmem:[%s1214_s29 + $0x48] sm:$0xff] }
  0x64   : > { %v517_v60 = vadd.f32 %v489_v59, %v433_v54  ;;  %v545_v61 = vsub.f32 1.0, %v377_v53  ;;  %v294_v62 = vsel %vm266_vm4, 0.5, %v1026_v4  ;;  %vm322_vm5 = vcmp.eq.s32.totalorder %v210_v46, 3  ;;  %v243_v59 = vld [vmem:[%s1214_s29 + $0x50] sm:$0xff] }
  0x65   : > { %683 = vst [vmem:[%s1243_s19 + $0x10] sm:$0xff] %v655_v56  ;;  %v600_v0 = vmul.f32 %v572_v57, %v544_v48  ;;  %v350_v1 = vsel %vm322_vm5, 1.0, %v1026_v4  ;;  %vm406_vm6 = vcmp.eq.s32.totalorder %v238_v55, 1  ;;  %vm462_vm7 = vcmp.eq.s32.totalorder %v238_v55, 3 }
  0x66   : > { %v573_v2 = vsub.f32 1.0, %v517_v60  ;;  %v629_v3 = vmul.f32 %v517_v60, %v377_v53  ;;  %v378_v5 = vadd.f32 %v350_v1, %v294_v62  ;;  %v434_v6 = vsel %vm406_vm6, 0.5, %v1026_v4  ;;  %v216_v60 = vld [vmem:[%s1206_s17 + $0x58] sm:$0xff] }
  0x67   : > { %v656_v9 = vadd.f32 %v628_v58, %v600_v0  ;;  %v490_v10 = vsel %vm462_vm7, 1.0, %v1026_v4  ;;  %vm267_vm8 = vcmp.eq.s32.totalorder %v211_v63, 1  ;;  %vm323_vm9 = vcmp.eq.s32.totalorder %v211_v63, 3 }
  0x68   : > { %v601_v11 = vmul.f32 %v573_v2, %v545_v61  ;;  %v518_v12 = vadd.f32 %v490_v10, %v434_v6  ;;  %v546_v13 = vsub.f32 1.0, %v378_v5  ;;  %v295_v14 = vsel %vm267_vm8, 0.5, %v1026_v4  ;;  %v217_v10 = vld [vmem:[%s1206_s17 + $0x60] sm:$0xff] }
  0x69   : > { %684 = vst [vmem:[%s1243_s19 + $0x18] sm:$0xff] %v656_v9  ;;  %v351_v15 = vsel %vm323_vm9, 1.0, %v1026_v4  ;;  %vm407_vm10 = vcmp.eq.s32.totalorder %v239_v7, 1  ;;  %vm463_vm11 = vcmp.eq.s32.totalorder %v239_v7, 3  ;;  %vm268_vm12 = vcmp.eq.s32.totalorder %v212_v8, 1  ;;  %v244_v9 = vld [vmem:[%s1214_s29 + $0x58] sm:$0xff] }
  0x6a   : > { %v657_v16 = vadd.f32 %v629_v3, %v601_v11  ;;  %v574_v17 = vsub.f32 1.0, %v518_v12  ;;  %v630_v18 = vmul.f32 %v518_v12, %v378_v5  ;;  %v379_v19 = vadd.f32 %v351_v15, %v295_v14 }
  0x6b   : > { %v435_v22 = vsel %vm407_vm10, 0.5, %v1026_v4  ;;  %v491_v23 = vsel %vm463_vm11, 1.0, %v1026_v4  ;;  %v296_v24 = vsel %vm268_vm12, 0.5, %v1026_v4  ;;  %vm324_vm13 = vcmp.eq.s32.totalorder %v212_v8, 3 }
  0x6c   : > { %685 = vst [vmem:[%s1243_s19 + $0x20] sm:$0xff] %v657_v16  ;;  %v602_v25 = vmul.f32 %v574_v17, %v546_v13  ;;  %v519_v26 = vadd.f32 %v491_v23, %v435_v22  ;;  %v547_v27 = vsub.f32 1.0, %v379_v19  ;;  %v352_v28 = vsel %vm324_vm13, 1.0, %v1026_v4 }
  0x6d   : > { %v380_v29 = vadd.f32 %v352_v28, %v296_v24  ;;  %vm408_vm14 = vcmp.eq.s32.totalorder %v240_v20, 1  ;;  %vm464_vm15 = vcmp.eq.s32.totalorder %v240_v20, 3  ;;  %vm269_vm0 = vcmp.eq.s32.totalorder %v213_v21, 1  ;;  %v218_v24 = vld [vmem:[%s1206_s17 + $0x68] sm:$0xff] }
  0x6e   : > { %v658_v31 = vadd.f32 %v630_v18, %v602_v25  ;;  %v575_v32 = vsub.f32 1.0, %v519_v26  ;;  %v631_v33 = vmul.f32 %v519_v26, %v379_v19  ;;  %v436_v34 = vsel %vm408_vm14, 0.5, %v1026_v4  ;;  %v245_v19 = vld [vmem:[%s1214_s29 + $0x60] sm:$0xff] }
  0x6f   : > { %v492_v36 = vsel %vm464_vm15, 1.0, %v1026_v4  ;;  %v548_v37 = vsub.f32 1.0, %v380_v29  ;;  %v297_v38 = vsel %vm269_vm0, 0.5, %v1026_v4  ;;  %vm325_vm1 = vcmp.eq.s32.totalorder %v213_v21, 3 }
  0x70   : > { %686 = vst [vmem:[%s1243_s19 + $0x28] sm:$0xff] %v658_v31  ;;  %v603_v39 = vmul.f32 %v575_v32, %v547_v27  ;;  %v520_v40 = vadd.f32 %v492_v36, %v436_v34  ;;  %v353_v41 = vsel %vm325_vm1, 1.0, %v1026_v4  ;;  %vm409_vm2 = vcmp.eq.s32.totalorder %v241_v30, 1 }
  0x71   : > { %v381_v42 = vadd.f32 %v353_v41, %v297_v38  ;;  %v437_v43 = vsel %vm409_vm2, 0.5, %v1026_v4  ;;  %vm465_vm3 = vcmp.eq.s32.totalorder %v241_v30, 3  ;;  %vm270_vm4 = vcmp.eq.s32.totalorder %v214_v35, 1  ;;  %v219_v41 = vld [vmem:[%s1206_s17 + $0x70] sm:$0xff] }
  0x72   : > { %v659_v45 = vadd.f32 %v631_v33, %v603_v39  ;;  %v576_v46 = vsub.f32 1.0, %v520_v40  ;;  %v632_v47 = vmul.f32 %v520_v40, %v380_v29  ;;  %v493_v48 = vsel %vm465_vm3, 1.0, %v1026_v4  ;;  %v246_v33 = vld [vmem:[%s1214_s29 + $0x68] sm:$0xff] }
  0x73   : > { %v521_v49 = vadd.f32 %v493_v48, %v437_v43  ;;  %v549_v50 = vsub.f32 1.0, %v381_v42  ;;  %v298_v51 = vsel %vm270_vm4, 0.5, %v1026_v4  ;;  %vm326_vm5 = vcmp.eq.s32.totalorder %v214_v35, 3  ;;  %v247_v48 = vld [vmem:[%s1214_s29 + $0x70] sm:$0xff] }
  0x74   : > { %687 = vst [vmem:[%s1243_s19 + $0x30] sm:$0xff] %v659_v45  ;;  %v604_v53 = vmul.f32 %v576_v46, %v548_v37  ;;  %v354_v54 = vsel %vm326_vm5, 1.0, %v1026_v4  ;;  %vm410_vm6 = vcmp.eq.s32.totalorder %v242_v44, 1  ;;  %vm466_vm7 = vcmp.eq.s32.totalorder %v242_v44, 3 }
  0x75   : > { %v577_v55 = vsub.f32 1.0, %v521_v49  ;;  %v633_v56 = vmul.f32 %v521_v49, %v381_v42  ;;  %v382_v57 = vadd.f32 %v354_v54, %v298_v51  ;;  %v438_v58 = vsel %vm410_vm6, 0.5, %v1026_v4  ;;  %v220_v49 = vld [vmem:[%s1206_s17 + $0x78] sm:$0xff] }
  0x76   : > { %v660_v61 = vadd.f32 %v632_v47, %v604_v53  ;;  %v494_v62 = vsel %vm466_vm7, 1.0, %v1026_v4  ;;  %vm271_vm8 = vcmp.eq.s32.totalorder %v215_v52, 1  ;;  %vm327_vm9 = vcmp.eq.s32.totalorder %v215_v52, 3 }
  0x77   : > { %v605_v63 = vmul.f32 %v577_v55, %v549_v50  ;;  %v522_v0 = vadd.f32 %v494_v62, %v438_v58  ;;  %v550_v1 = vsub.f32 1.0, %v382_v57  ;;  %v299_v2 = vsel %vm271_vm8, 0.5, %v1026_v4  ;;  %v221_v62 = vld [vmem:[%s1206_s17 + $0x80] sm:$0xff] }
  0x78   : > { %688 = vst [vmem:[%s1243_s19 + $0x38] sm:$0xff] %v660_v61  ;;  %v355_v3 = vsel %vm327_vm9, 1.0, %v1026_v4  ;;  %vm411_vm10 = vcmp.eq.s32.totalorder %v243_v59, 1  ;;  %vm467_vm11 = vcmp.eq.s32.totalorder %v243_v59, 3  ;;  %vm272_vm12 = vcmp.eq.s32.totalorder %v216_v60, 1  ;;  %v248_v61 = vld [vmem:[%s1214_s29 + $0x78] sm:$0xff] }
  0x79   : > { %v661_v5 = vadd.f32 %v633_v56, %v605_v63  ;;  %v578_v6 = vsub.f32 1.0, %v522_v0  ;;  %v634_v7 = vmul.f32 %v522_v0, %v382_v57  ;;  %v383_v8 = vadd.f32 %v355_v3, %v299_v2 }
  0x7a   : > { %v439_v11 = vsel %vm411_vm10, 0.5, %v1026_v4  ;;  %v495_v12 = vsel %vm467_vm11, 1.0, %v1026_v4  ;;  %v300_v13 = vsel %vm272_vm12, 0.5, %v1026_v4  ;;  %vm328_vm13 = vcmp.eq.s32.totalorder %v216_v60, 3 }
  0x7b   : > { %689 = vst [vmem:[%s1243_s19 + $0x40] sm:$0xff] %v661_v5  ;;  %v606_v14 = vmul.f32 %v578_v6, %v550_v1  ;;  %v523_v15 = vadd.f32 %v495_v12, %v439_v11  ;;  %v551_v16 = vsub.f32 1.0, %v383_v8  ;;  %v356_v17 = vsel %vm328_vm13, 1.0, %v1026_v4 }
  0x7c   : > { %v384_v18 = vadd.f32 %v356_v17, %v300_v13  ;;  %vm412_vm14 = vcmp.eq.s32.totalorder %v244_v9, 1  ;;  %vm468_vm15 = vcmp.eq.s32.totalorder %v244_v9, 3  ;;  %vm273_vm0 = vcmp.eq.s32.totalorder %v217_v10, 1  ;;  %v222_v13 = vld [vmem:[%s1206_s17 + $0x88] sm:$0xff] }
  0x7d   : > { %v662_v20 = vadd.f32 %v634_v7, %v606_v14  ;;  %v579_v21 = vsub.f32 1.0, %v523_v15  ;;  %v635_v22 = vmul.f32 %v523_v15, %v383_v8  ;;  %v440_v23 = vsel %vm412_vm14, 0.5, %v1026_v4  ;;  %v249_v8 = vld [vmem:[%s1214_s29 + $0x80] sm:$0xff] }
  0x7e   : > { %v496_v25 = vsel %vm468_vm15, 1.0, %v1026_v4  ;;  %v552_v26 = vsub.f32 1.0, %v384_v18  ;;  %v301_v27 = vsel %vm273_vm0, 0.5, %v1026_v4  ;;  %vm329_vm1 = vcmp.eq.s32.totalorder %v217_v10, 3 }
  0x7f   : > { %690 = vst [vmem:[%s1243_s19 + $0x48] sm:$0xff] %v662_v20  ;;  %v607_v28 = vmul.f32 %v579_v21, %v551_v16  ;;  %v524_v29 = vadd.f32 %v496_v25, %v440_v23  ;;  %v357_v30 = vsel %vm329_vm1, 1.0, %v1026_v4  ;;  %vm413_vm2 = vcmp.eq.s32.totalorder %v245_v19, 1 }
  0x80   : > { %v385_v31 = vadd.f32 %v357_v30, %v301_v27  ;;  %v441_v32 = vsel %vm413_vm2, 0.5, %v1026_v4  ;;  %vm469_vm3 = vcmp.eq.s32.totalorder %v245_v19, 3  ;;  %vm274_vm4 = vcmp.eq.s32.totalorder %v218_v24, 1  ;;  %v223_v30 = vld [vmem:[%s1206_s17 + $0x90] sm:$0xff] }
  0x81   : > { %v663_v34 = vadd.f32 %v635_v22, %v607_v28  ;;  %v580_v35 = vsub.f32 1.0, %v524_v29  ;;  %v636_v36 = vmul.f32 %v524_v29, %v384_v18  ;;  %v497_v37 = vsel %vm469_vm3, 1.0, %v1026_v4  ;;  %v250_v22 = vld [vmem:[%s1214_s29 + $0x88] sm:$0xff] }
  0x82   : > { %v525_v38 = vadd.f32 %v497_v37, %v441_v32  ;;  %v553_v39 = vsub.f32 1.0, %v385_v31  ;;  %v302_v40 = vsel %vm274_vm4, 0.5, %v1026_v4  ;;  %vm330_vm5 = vcmp.eq.s32.totalorder %v218_v24, 3  ;;  %v251_v37 = vld [vmem:[%s1214_s29 + $0x90] sm:$0xff] }
  0x83   : > { %691 = vst [vmem:[%s1243_s19 + $0x50] sm:$0xff] %v663_v34  ;;  %v608_v42 = vmul.f32 %v580_v35, %v552_v26  ;;  %v358_v43 = vsel %vm330_vm5, 1.0, %v1026_v4  ;;  %vm414_vm6 = vcmp.eq.s32.totalorder %v246_v33, 1  ;;  %vm470_vm7 = vcmp.eq.s32.totalorder %v246_v33, 3 }
  0x84   : > { %v581_v44 = vsub.f32 1.0, %v525_v38  ;;  %v637_v45 = vmul.f32 %v525_v38, %v385_v31  ;;  %v386_v46 = vadd.f32 %v358_v43, %v302_v40  ;;  %v442_v47 = vsel %vm414_vm6, 0.5, %v1026_v4  ;;  %v224_v38 = vld [vmem:[%s1206_s17 + $0x98] sm:$0xff] }
  0x85   : > { %v664_v50 = vadd.f32 %v636_v36, %v608_v42  ;;  %v498_v51 = vsel %vm470_vm7, 1.0, %v1026_v4  ;;  %vm275_vm8 = vcmp.eq.s32.totalorder %v219_v41, 1  ;;  %vm331_vm9 = vcmp.eq.s32.totalorder %v219_v41, 3 }
  0x86   : > { %v609_v52 = vmul.f32 %v581_v44, %v553_v39  ;;  %v526_v53 = vadd.f32 %v498_v51, %v442_v47  ;;  %v554_v54 = vsub.f32 1.0, %v386_v46  ;;  %v303_v55 = vsel %vm275_vm8, 0.5, %v1026_v4  ;;  %v225_v51 = vld [vmem:[%s1206_s17 + $0xa0] sm:$0xff] }
  0x87   : > { %692 = vst [vmem:[%s1243_s19 + $0x58] sm:$0xff] %v664_v50  ;;  %v359_v56 = vsel %vm331_vm9, 1.0, %v1026_v4  ;;  %vm415_vm10 = vcmp.eq.s32.totalorder %v247_v48, 1  ;;  %vm471_vm11 = vcmp.eq.s32.totalorder %v247_v48, 3  ;;  %vm276_vm12 = vcmp.eq.s32.totalorder %v220_v49, 1  ;;  %v252_v50 = vld [vmem:[%s1214_s29 + $0x98] sm:$0xff] }
  0x88   : > { %v665_v57 = vadd.f32 %v637_v45, %v609_v52  ;;  %v582_v58 = vsub.f32 1.0, %v526_v53  ;;  %v638_v59 = vmul.f32 %v526_v53, %v386_v46  ;;  %v387_v60 = vadd.f32 %v359_v56, %v303_v55 }
  0x89   : > { %v443_v63 = vsel %vm415_vm10, 0.5, %v1026_v4  ;;  %v499_v0 = vsel %vm471_vm11, 1.0, %v1026_v4  ;;  %v304_v1 = vsel %vm276_vm12, 0.5, %v1026_v4  ;;  %vm332_vm13 = vcmp.eq.s32.totalorder %v220_v49, 3 }
  0x8a   : > { %693 = vst [vmem:[%s1243_s19 + $0x60] sm:$0xff] %v665_v57  ;;  %v610_v2 = vmul.f32 %v582_v58, %v554_v54  ;;  %v527_v3 = vadd.f32 %v499_v0, %v443_v63  ;;  %v555_v5 = vsub.f32 1.0, %v387_v60  ;;  %v360_v6 = vsel %vm332_vm13, 1.0, %v1026_v4 }
  0x8b   : > { %v388_v7 = vadd.f32 %v360_v6, %v304_v1  ;;  %vm416_vm14 = vcmp.eq.s32.totalorder %v248_v61, 1  ;;  %vm472_vm15 = vcmp.eq.s32.totalorder %v248_v61, 3  ;;  %vm277_vm0 = vcmp.eq.s32.totalorder %v221_v62, 1  ;;  %v226_v1 = vld [vmem:[%s1206_s17 + $0xa8] sm:$0xff] }
  0x8c   : > { %v666_v9 = vadd.f32 %v638_v59, %v610_v2  ;;  %v583_v10 = vsub.f32 1.0, %v527_v3  ;;  %v639_v11 = vmul.f32 %v527_v3, %v387_v60  ;;  %v444_v12 = vsel %vm416_vm14, 0.5, %v1026_v4  ;;  %v253_v60 = vld [vmem:[%s1214_s29 + $0xa0] sm:$0xff] }
  0x8d   : > { %v500_v14 = vsel %vm472_vm15, 1.0, %v1026_v4  ;;  %v556_v15 = vsub.f32 1.0, %v388_v7  ;;  %v305_v16 = vsel %vm277_vm0, 0.5, %v1026_v4  ;;  %vm333_vm1 = vcmp.eq.s32.totalorder %v221_v62, 3 }
  0x8e   : > { %694 = vst [vmem:[%s1243_s19 + $0x68] sm:$0xff] %v666_v9  ;;  %v611_v17 = vmul.f32 %v583_v10, %v555_v5  ;;  %v528_v18 = vadd.f32 %v500_v14, %v444_v12  ;;  %v361_v19 = vsel %vm333_vm1, 1.0, %v1026_v4  ;;  %vm417_vm2 = vcmp.eq.s32.totalorder %v249_v8, 1 }
  0x8f   : > { %v389_v20 = vadd.f32 %v361_v19, %v305_v16  ;;  %v445_v21 = vsel %vm417_vm2, 0.5, %v1026_v4  ;;  %vm473_vm3 = vcmp.eq.s32.totalorder %v249_v8, 3  ;;  %vm278_vm4 = vcmp.eq.s32.totalorder %v222_v13, 1  ;;  %v227_v19 = vld [vmem:[%s1206_s17 + $0xb0] sm:$0xff] }
  0x90   : > { %v667_v23 = vadd.f32 %v639_v11, %v611_v17  ;;  %v584_v24 = vsub.f32 1.0, %v528_v18  ;;  %v640_v25 = vmul.f32 %v528_v18, %v388_v7  ;;  %v501_v26 = vsel %vm473_vm3, 1.0, %v1026_v4  ;;  %v254_v11 = vld [vmem:[%s1214_s29 + $0xa8] sm:$0xff] }
  0x91   : > { %v529_v27 = vadd.f32 %v501_v26, %v445_v21  ;;  %v557_v28 = vsub.f32 1.0, %v389_v20  ;;  %v306_v29 = vsel %vm278_vm4, 0.5, %v1026_v4  ;;  %vm334_vm5 = vcmp.eq.s32.totalorder %v222_v13, 3  ;;  %v255_v26 = vld [vmem:[%s1214_s29 + $0xb0] sm:$0xff] }
  0x92   : > { %695 = vst [vmem:[%s1243_s19 + $0x70] sm:$0xff] %v667_v23  ;;  %v612_v31 = vmul.f32 %v584_v24, %v556_v15  ;;  %v362_v32 = vsel %vm334_vm5, 1.0, %v1026_v4  ;;  %vm418_vm6 = vcmp.eq.s32.totalorder %v250_v22, 1  ;;  %vm474_vm7 = vcmp.eq.s32.totalorder %v250_v22, 3 }
  0x93   : > { %v585_v33 = vsub.f32 1.0, %v529_v27  ;;  %v641_v34 = vmul.f32 %v529_v27, %v389_v20  ;;  %v390_v35 = vadd.f32 %v362_v32, %v306_v29  ;;  %v446_v36 = vsel %vm418_vm6, 0.5, %v1026_v4  ;;  %v228_v27 = vld [vmem:[%s1206_s17 + $0xb8] sm:$0xff] }
  0x94   : > { %v668_v39 = vadd.f32 %v640_v25, %v612_v31  ;;  %v502_v40 = vsel %vm474_vm7, 1.0, %v1026_v4  ;;  %vm279_vm8 = vcmp.eq.s32.totalorder %v223_v30, 1  ;;  %vm335_vm9 = vcmp.eq.s32.totalorder %v223_v30, 3 }
  0x95   : > { %v613_v41 = vmul.f32 %v585_v33, %v557_v28  ;;  %v530_v42 = vadd.f32 %v502_v40, %v446_v36  ;;  %v558_v43 = vsub.f32 1.0, %v390_v35  ;;  %v307_v44 = vsel %vm279_vm8, 0.5, %v1026_v4  ;;  %v229_v40 = vld [vmem:[%s1206_s17 + $0xc0] sm:$0xff] }
  0x96   : > { %696 = vst [vmem:[%s1243_s19 + $0x78] sm:$0xff] %v668_v39  ;;  %v363_v45 = vsel %vm335_vm9, 1.0, %v1026_v4  ;;  %vm419_vm10 = vcmp.eq.s32.totalorder %v251_v37, 1  ;;  %vm475_vm11 = vcmp.eq.s32.totalorder %v251_v37, 3  ;;  %vm280_vm12 = vcmp.eq.s32.totalorder %v224_v38, 1  ;;  %v256_v39 = vld [vmem:[%s1214_s29 + $0xb8] sm:$0xff] }
  0x97   : > { %v669_v46 = vadd.f32 %v641_v34, %v613_v41  ;;  %v586_v47 = vsub.f32 1.0, %v530_v42  ;;  %v642_v48 = vmul.f32 %v530_v42, %v390_v35  ;;  %v391_v49 = vadd.f32 %v363_v45, %v307_v44 }
  0x98   : > { %v447_v52 = vsel %vm419_vm10, 0.5, %v1026_v4  ;;  %v503_v53 = vsel %vm475_vm11, 1.0, %v1026_v4  ;;  %v308_v54 = vsel %vm280_vm12, 0.5, %v1026_v4  ;;  %vm336_vm13 = vcmp.eq.s32.totalorder %v224_v38, 3 }
  0x99   : > { %697 = vst [vmem:[%s1243_s19 + $0x80] sm:$0xff] %v669_v46  ;;  %v614_v55 = vmul.f32 %v586_v47, %v558_v43  ;;  %v531_v56 = vadd.f32 %v503_v53, %v447_v52  ;;  %v559_v57 = vsub.f32 1.0, %v391_v49  ;;  %v364_v58 = vsel %vm336_vm13, 1.0, %v1026_v4 }
  0x9a   : > { %v392_v59 = vadd.f32 %v364_v58, %v308_v54  ;;  %vm420_vm14 = vcmp.eq.s32.totalorder %v252_v50, 1  ;;  %vm476_vm15 = vcmp.eq.s32.totalorder %v252_v50, 3  ;;  %vm281_vm0 = vcmp.eq.s32.totalorder %v225_v51, 1  ;;  %v230_v54 = vld [vmem:[%s1206_s17 + $0xc8] sm:$0xff] }
  0x9b   : > { %v670_v61 = vadd.f32 %v642_v48, %v614_v55  ;;  %v587_v62 = vsub.f32 1.0, %v531_v56  ;;  %v643_v63 = vmul.f32 %v531_v56, %v391_v49  ;;  %v448_v0 = vsel %vm420_vm14, 0.5, %v1026_v4  ;;  %v257_v49 = vld [vmem:[%s1214_s29 + $0xc0] sm:$0xff] }
  0x9c   : > { %v504_v2 = vsel %vm476_vm15, 1.0, %v1026_v4  ;;  %v560_v3 = vsub.f32 1.0, %v392_v59  ;;  %v309_v5 = vsel %vm281_vm0, 0.5, %v1026_v4  ;;  %vm337_vm1 = vcmp.eq.s32.totalorder %v225_v51, 3 }
  0x9d   : > { %698 = vst [vmem:[%s1243_s19 + $0x88] sm:$0xff] %v670_v61  ;;  %v615_v6 = vmul.f32 %v587_v62, %v559_v57  ;;  %v532_v7 = vadd.f32 %v504_v2, %v448_v0  ;;  %v365_v8 = vsel %vm337_vm1, 1.0, %v1026_v4  ;;  %vm421_vm2 = vcmp.eq.s32.totalorder %v253_v60, 1 }
  0x9e   : > { %v393_v9 = vadd.f32 %v365_v8, %v309_v5  ;;  %v449_v10 = vsel %vm421_vm2, 0.5, %v1026_v4  ;;  %vm477_vm3 = vcmp.eq.s32.totalorder %v253_v60, 3  ;;  %vm282_vm4 = vcmp.eq.s32.totalorder %v226_v1, 1  ;;  %v231_v8 = vld [vmem:[%s1206_s17 + $0xd0] sm:$0xff] }
  0x9f   : > { %v671_v12 = vadd.f32 %v643_v63, %v615_v6  ;;  %v588_v13 = vsub.f32 1.0, %v532_v7  ;;  %v644_v14 = vmul.f32 %v532_v7, %v392_v59  ;;  %v505_v15 = vsel %vm477_vm3, 1.0, %v1026_v4  ;;  %v258_v63 = vld [vmem:[%s1214_s29 + $0xc8] sm:$0xff] }
  0xa0   : > { %v533_v16 = vadd.f32 %v505_v15, %v449_v10  ;;  %v561_v17 = vsub.f32 1.0, %v393_v9  ;;  %v310_v18 = vsel %vm282_vm4, 0.5, %v1026_v4  ;;  %vm338_vm5 = vcmp.eq.s32.totalorder %v226_v1, 3  ;;  %v259_v15 = vld [vmem:[%s1214_s29 + $0xd0] sm:$0xff] }
  0xa1   : > { %699 = vst [vmem:[%s1243_s19 + $0x90] sm:$0xff] %v671_v12  ;;  %v616_v20 = vmul.f32 %v588_v13, %v560_v3  ;;  %v366_v21 = vsel %vm338_vm5, 1.0, %v1026_v4  ;;  %vm422_vm6 = vcmp.eq.s32.totalorder %v254_v11, 1  ;;  %vm478_vm7 = vcmp.eq.s32.totalorder %v254_v11, 3 }
  0xa2   : > { %v589_v22 = vsub.f32 1.0, %v533_v16  ;;  %v645_v23 = vmul.f32 %v533_v16, %v393_v9  ;;  %v394_v24 = vadd.f32 %v366_v21, %v310_v18  ;;  %v450_v25 = vsel %vm422_vm6, 0.5, %v1026_v4  ;;  %v232_v16 = vld [vmem:[%s1206_s17 + $0xd8] sm:$0xff] }
  0xa3   : > { %v672_v28 = vadd.f32 %v644_v14, %v616_v20  ;;  %v506_v29 = vsel %vm478_vm7, 1.0, %v1026_v4  ;;  %vm283_vm8 = vcmp.eq.s32.totalorder %v227_v19, 1  ;;  %vm339_vm9 = vcmp.eq.s32.totalorder %v227_v19, 3 }
  0xa4   : > { %v617_v30 = vmul.f32 %v589_v22, %v561_v17  ;;  %v534_v31 = vadd.f32 %v506_v29, %v450_v25  ;;  %v562_v32 = vsub.f32 1.0, %v394_v24  ;;  %v311_v33 = vsel %vm283_vm8, 0.5, %v1026_v4 }
  0xa5   : > { %700 = vst [vmem:[%s1243_s19 + $0x98] sm:$0xff] %v672_v28  ;;  %v367_v34 = vsel %vm339_vm9, 1.0, %v1026_v4  ;;  %vm423_vm10 = vcmp.eq.s32.totalorder %v255_v26, 1  ;;  %vm479_vm11 = vcmp.eq.s32.totalorder %v255_v26, 3  ;;  %vm284_vm12 = vcmp.eq.s32.totalorder %v228_v27, 1  ;;  %v260_v28 = vld [vmem:[%s1214_s29 + $0xd8] sm:$0xff] }
  0xa6   : > { %v673_v35 = vadd.f32 %v645_v23, %v617_v30  ;;  %v590_v36 = vsub.f32 1.0, %v534_v31  ;;  %v646_v37 = vmul.f32 %v534_v31, %v394_v24  ;;  %v395_v38 = vadd.f32 %v367_v34, %v311_v33 }
  0xa7   : > { %v451_v41 = vsel %vm423_vm10, 0.5, %v1026_v4  ;;  %v507_v42 = vsel %vm479_vm11, 1.0, %v1026_v4  ;;  %v312_v43 = vsel %vm284_vm12, 0.5, %v1026_v4  ;;  %vm340_vm13 = vcmp.eq.s32.totalorder %v228_v27, 3 }
  0xa8   : > { %701 = vst [vmem:[%s1243_s19 + $0xa0] sm:$0xff] %v673_v35  ;;  %v618_v44 = vmul.f32 %v590_v36, %v562_v32  ;;  %v535_v45 = vadd.f32 %v507_v42, %v451_v41  ;;  %v563_v46 = vsub.f32 1.0, %v395_v38  ;;  %v368_v47 = vsel %vm340_vm13, 1.0, %v1026_v4 }
  0xa9   : > { %v396_v48 = vadd.f32 %v368_v47, %v312_v43  ;;  %vm424_vm14 = vcmp.eq.s32.totalorder %v256_v39, 1  ;;  %vm480_vm15 = vcmp.eq.s32.totalorder %v256_v39, 3  ;;  %vm285_vm0 = vcmp.eq.s32.totalorder %v229_v40, 1 }
  0xaa   : > { %v674_v50 = vadd.f32 %v646_v37, %v618_v44  ;;  %v591_v51 = vsub.f32 1.0, %v535_v45  ;;  %v647_v52 = vmul.f32 %v535_v45, %v395_v38  ;;  %v452_v53 = vsel %vm424_vm14, 0.5, %v1026_v4 }
  0xab   : > { %v508_v55 = vsel %vm480_vm15, 1.0, %v1026_v4  ;;  %v564_v56 = vsub.f32 1.0, %v396_v48  ;;  %v313_v57 = vsel %vm285_vm0, 0.5, %v1026_v4  ;;  %vm341_vm1 = vcmp.eq.s32.totalorder %v229_v40, 3 }
  0xac   : > { %702 = vst [vmem:[%s1243_s19 + $0xa8] sm:$0xff] %v674_v50  ;;  %v619_v58 = vmul.f32 %v591_v51, %v563_v46  ;;  %v536_v59 = vadd.f32 %v508_v55, %v452_v53  ;;  %v369_v60 = vsel %vm341_vm1, 1.0, %v1026_v4  ;;  %vm425_vm2 = vcmp.eq.s32.totalorder %v257_v49, 1 }
  0xad   : > { %v397_v61 = vadd.f32 %v369_v60, %v313_v57  ;;  %v453_v62 = vsel %vm425_vm2, 0.5, %v1026_v4  ;;  %vm481_vm3 = vcmp.eq.s32.totalorder %v257_v49, 3  ;;  %vm286_vm4 = vcmp.eq.s32.totalorder %v230_v54, 1 }
  0xae   : > { %v675_v0 = vadd.f32 %v647_v52, %v619_v58  ;;  %v592_v1 = vsub.f32 1.0, %v536_v59  ;;  %v648_v2 = vmul.f32 %v536_v59, %v396_v48  ;;  %v509_v3 = vsel %vm481_vm3, 1.0, %v1026_v4 }
  0xaf   : > { %v537_v5 = vadd.f32 %v509_v3, %v453_v62  ;;  %v565_v6 = vsub.f32 1.0, %v397_v61  ;;  %v314_v7 = vsel %vm286_vm4, 0.5, %v1026_v4  ;;  %vm342_vm5 = vcmp.eq.s32.totalorder %v230_v54, 3 }
  0xb0   : > { %703 = vst [vmem:[%s1243_s19 + $0xb0] sm:$0xff] %v675_v0  ;;  %v620_v9 = vmul.f32 %v592_v1, %v564_v56  ;;  %v370_v10 = vsel %vm342_vm5, 1.0, %v1026_v4  ;;  %vm426_vm6 = vcmp.eq.s32.totalorder %v258_v63, 1  ;;  %vm482_vm7 = vcmp.eq.s32.totalorder %v258_v63, 3 }
  0xb1   : > { %v593_v11 = vsub.f32 1.0, %v537_v5  ;;  %v649_v12 = vmul.f32 %v537_v5, %v397_v61  ;;  %v398_v13 = vadd.f32 %v370_v10, %v314_v7  ;;  %v454_v14 = vsel %vm426_vm6, 0.5, %v1026_v4 }
  0xb2   : > { %v676_v17 = vadd.f32 %v648_v2, %v620_v9  ;;  %v510_v18 = vsel %vm482_vm7, 1.0, %v1026_v4  ;;  %vm287_vm8 = vcmp.eq.s32.totalorder %v231_v8, 1  ;;  %vm343_vm9 = vcmp.eq.s32.totalorder %v231_v8, 3 }
  0xb3   : > { %v621_v19 = vmul.f32 %v593_v11, %v565_v6  ;;  %v538_v20 = vadd.f32 %v510_v18, %v454_v14  ;;  %v566_v21 = vsub.f32 1.0, %v398_v13  ;;  %v315_v22 = vsel %vm287_vm8, 0.5, %v1026_v4 }
  0xb4   : > { %704 = vst [vmem:[%s1243_s19 + $0xb8] sm:$0xff] %v676_v17  ;;  %v371_v23 = vsel %vm343_vm9, 1.0, %v1026_v4  ;;  %vm427_vm10 = vcmp.eq.s32.totalorder %v259_v15, 1  ;;  %vm483_vm11 = vcmp.eq.s32.totalorder %v259_v15, 3  ;;  %vm288_vm12 = vcmp.eq.s32.totalorder %v232_v16, 1 }
  0xb5   : > { %v677_v24 = vadd.f32 %v649_v12, %v621_v19  ;;  %v594_v25 = vsub.f32 1.0, %v538_v20  ;;  %v650_v26 = vmul.f32 %v538_v20, %v398_v13  ;;  %v399_v27 = vadd.f32 %v371_v23, %v315_v22 }
  0xb6   : > { %v455_v29 = vsel %vm427_vm10, 0.5, %v1026_v4  ;;  %v511_v30 = vsel %vm483_vm11, 1.0, %v1026_v4  ;;  %v316_v31 = vsel %vm288_vm12, 0.5, %v1026_v4  ;;  %vm344_vm13 = vcmp.eq.s32.totalorder %v232_v16, 3 }
  0xb7   : > { %705 = vst [vmem:[%s1243_s19 + $0xc0] sm:$0xff] %v677_v24  ;;  %v622_v32 = vmul.f32 %v594_v25, %v566_v21  ;;  %v539_v33 = vadd.f32 %v511_v30, %v455_v29  ;;  %v567_v34 = vsub.f32 1.0, %v399_v27  ;;  %v372_v35 = vsel %vm344_vm13, 1.0, %v1026_v4 }
  0xb8   : > { %v400_v36 = vadd.f32 %v372_v35, %v316_v31  ;;  %vm428_vm14 = vcmp.eq.s32.totalorder %v260_v28, 1  ;;  %vm484_vm15 = vcmp.eq.s32.totalorder %v260_v28, 3 }
  0xb9   : > { %v678_v37 = vadd.f32 %v650_v26, %v622_v32  ;;  %v595_v38 = vsub.f32 1.0, %v539_v33  ;;  %v651_v39 = vmul.f32 %v539_v33, %v399_v27  ;;  %v456_v40 = vsel %vm428_vm14, 0.5, %v1026_v4 }
  0xba   : > { %v512_v41 = vsel %vm484_vm15, 1.0, %v1026_v4  ;;  %v568_v44 = vsub.f32 1.0, %v400_v36 }
  0xbb   : > { %706 = vst [vmem:[%s1243_s19 + $0xc8] sm:$0xff] %v678_v37  ;;  %v623_v42 = vmul.f32 %v595_v38, %v567_v34  ;;  %v540_v43 = vadd.f32 %v512_v41, %v456_v40 }
  0xbd   : > { %v679_v45 = vadd.f32 %v651_v39, %v623_v42  ;;  %v596_v46 = vsub.f32 1.0, %v540_v43  ;;  %v652_v47 = vmul.f32 %v540_v43, %v400_v36 }
  0xbf   : > { %707 = vst [vmem:[%s1243_s19 + $0xd0] sm:$0xff] %v679_v45  ;;  %v624_v48 = vmul.f32 %v596_v46, %v568_v44 }
  0xc1   : > { %v680_v49 = vadd.f32 %v652_v47, %v624_v48 }
  0xc3   : > { %708 = vst [vmem:[%s1243_s19 + $0xd8] sm:$0xff] %v680_v49 }
  0xc4   : > { %963 = shalt.err (!%p960_p11)
}
  0xc5   : > { %s964_s6 = scalar_lea.hbm %s1425_s27, 3584  ;;  %s968_s3 = scalar_lea.hbm %s1472_s2, 7168 }
  0xc6   : > { %p965_p3 = scmp.ne.s32.totalorder %s1425_s27, %s964_s6  ;;  %p969_p2 = scmp.lt.u32.totalorder %s1425_s27, %s1472_s2 }
  0xc7   : > { %p970_p4 = scmp.lt.u32.totalorder %s968_s3, %s964_s6  ;;  %p972_p13 = scmp.lt.u32.totalorder %s964_s6, %s1425_s27 }
  0xc8   : > { %p966_p8 = pnand %p965_p3, %p1481_p1 }
  0xc9   : > { %p971_p6 = por %p970_p4, %p969_p2 }
  0xca   : > { %p967_p0 = pneg %p966_p8 }
  0xcb   : > { %p973_p12 = por %p972_p13, %p971_p6 }
  0xcd   : > { %p974_p10 = pnand %p973_p12, %p967_p0 }
  0xcf   : > { %977 = shalt.err (!%p974_p10)
}
  0xd0   : > { %s1028_s22 = smov 128   ;;  %s1029_s29 = smov 8  }
  0xd1   : > { %838 = dma.vmem_to_hbm [thread:$0]  (%p1481_p1), %s1420_s5, 3584, %s1425_s27, %s710_s23, %s1028_s22, %s1028_s22, %s1029_s29  }
  0xd2 PF: > { %s738_s19 = sand.u32 1, %s1008_s9   ;;  %p1482_p5 = scmp.ne.s32.totalorder %s1477_s21, 0 }
  0xd3   : > { %p1483_p7 = scmp.ge.s32.totalorder %s1020_s12, 2  ;;  %s739_s4 = scalar_lea.sflag [#allocation4], %s738_s19 }
  0xd5   : > { %p848_p9 = pnand %p1483_p7, %p1482_p5 }
  0xd7   : > { %1003 = dma.done.wait (!%p848_p9), %s739_s4, 3584  }
  0xd8   : > { %1005 = vsyncadd (!%p848_p9), %s739_s4, 4294963712  ;;  %p18_p11 = scmp.ge.s32.totalorder %s1070_s15, 4   ;;  %s1484_s9 = smov %s1012_s10 }
  0xd9   : > { %s1485_s10 = smov %s1016_s11  ;;  %s1486_s11 = smov %s1082_s18 }
  0xda   : > { %s1487_s12 = smov %s1070_s15  ;;  %20 = sbr.rel (!%p18_p11) target bundleno = 7 (0x7), region = 86 }
  0xe1   :  { %744 = vsyncpa [#allocation3], 1 }
  0xe2   :  { %746 = vsyncpa [#allocation3 + $0x1], 1 }
  0xe3   :  { %747 = vsyncpa [#allocation6], 1 }
  0xe4   :  { %749 = vsyncpa [#allocation6 + $0x1], 1 }
  0xe5   :  { %750 = vsyncpa [#allocation4], 1 }
  0xe6   :  { %752 = vsyncpa [#allocation4 + $0x1], 1 }

</bundles_post_ra>
